<compile_context>
chip_gen: v6e
topology: v6e:2x2x1
jax: 0.10.0
libtpu: 0.0.40
codegen_flags: <defaults>
</compile_context>

<pallas_src>
import functools

import jax
import jax.numpy as jnp
from jax.experimental import pallas as pl
from jax.experimental.pallas import tpu as pltpu


# ----------------------------------------------------------------------------
# Fused kernel: [convex|convch] -> EXTAttention -> conv1ex -> outconvex  (EXT)
#                               -> CAM -> GAP -> ECA -> sigmoid gate     (CH)
#               output = EXT + CH
# ----------------------------------------------------------------------------
def _extchgap_kernel(scal_ref, x_ref, masks_ref, vecs_ref,
                     w_cc_ref, wkq_ref, wov_ref, w_c1_ref, w_o_ref,
                     o_ref, *, W, compute_dtype):
    C = x_ref.shape[1]
    N = x_ref.shape[2]
    k_pad = w_cc_ref.shape[1]            # 9*C rounded up for compute_dtype packing
    cd = compute_dtype

    masks = masks_ref[...]               # (9, N) halo masks, already in compute dtype
    vecs = vecs_ref[...]                 # (2C, 3) f32 packed per-channel shifts/biases

    def mm(w_ref, a):
        # MXU matmul; weights pre-cast at prep time, activations already in compute
        # dtype, accumulation always f32.
        return jnp.dot(w_ref[...], a, preferred_element_type=jnp.float32)

    def taps(z):
        # z: (C, N) in compute dtype.  Stack the 9 shifted + boundary-masked taps
        # (plus zero K-padding rows for sub-32-bit packing) into one (k_pad, N) slab
        # so a 3x3 "SAME" conv becomes a single big-K matmul.
        parts = []
        for t in range(9):
            sy, sx = t // 3 - 1, t % 3 - 1
            d = sy * W + sx
            if d == 0:
                parts.append(z)                        # center tap: no shift/mask
            else:
                zs = pltpu.roll(z, (-d) % N, 1)        # zs[p] = z[p + d] (mod N)
                parts.append(zs * masks[t:t + 1, :])   # zero out wrapped pixels
        if k_pad > 9 * C:
            parts.append(jnp.zeros((k_pad - 9 * C, N), cd))
        return jnp.concatenate(parts, axis=0)          # (k_pad, N)

    x = x_ref[0]                                       # (C, N) f32

    # ---- convex | convch fused: ONE (2C, k_pad) @ (k_pad, N) MXU matmul ----------
    # x_taps is single-use, so its (k_pad, N) slab dies before taps(att) is built
    # (only one tap slab is ever live -> peak activation VMEM halved vs. two slabs).
    x_taps = taps(x.astype(cd))
    cc = jnp.maximum(mm(w_cc_ref, x_taps) + vecs[:, 0:1], 0.0)    # (2C, N) f32
    ex = cc[:C]          # convex -> BN -> ReLU
    ch = cc[C:]          # convch -> BN -> ReLU

    # ---------------- EXT branch ----------------
    # EXTAttention, folded:  s = (Wk Wq / T) ex + Wk bq / T ; softmax over spatial ;
    # att = (bn_scale * Wo Wv) softmax(s) + bn_shift   (Wv = Wk^T)
    s = mm(wkq_ref, ex.astype(cd)) + vecs[:C, 1:2]
    s = s - jnp.max(s, axis=-1, keepdims=True)
    e = jnp.exp(s)
    attn = e * pl.reciprocal(jnp.sum(e, axis=-1, keepdims=True), approx=True)
    att = mm(wov_ref, attn.astype(cd)) + vecs[:C, 2:3]

    # conv1ex: 3x3 conv + BN + ReLU on the attention output
    ex1 = jnp.maximum(mm(w_c1_ref, taps(att.astype(cd))) + vecs[C:, 1:2], 0.0)

    # outconvex: Dropout2d is identity in eval; 1x1 conv with bias
    exout = mm(w_o_ref, ex1.astype(cd)) + vecs[C:, 2:3]

    # ---------------- CH branch ----------------
    # CAM_Module: energy = X X^T; attention = softmax(max(E) - E) == softmax(-E),
    # stabilized with a single min-reduction.  Energy stays f32 (precision-sensitive
    # K = N contraction; cheap relative to the conv matmuls).
    energy = jax.lax.dot_general(ch, ch, (((1,), (1,)), ((), ())),
                                 preferred_element_type=jnp.float32)   # (C, C)
    en = jnp.min(energy, axis=-1, keepdims=True) - energy
    pe = jnp.exp(en)
    cam_attn = pe * pl.reciprocal(jnp.sum(pe, axis=-1, keepdims=True), approx=True)
    cam = jnp.dot(cam_attn.astype(cd), ch.astype(cd),
                  preferred_element_type=jnp.float32)                  # (C, N)
    gamma = scal_ref[0]
    ca = gamma * cam + ch

    # GAP + ECA (Conv1d(1,1,k=3,pad=1) over channels) as 3 shifted FMAs + sigmoid
    gap = jnp.mean(ca, axis=-1, keepdims=True)                         # (C, 1)
    cidx = jax.lax.broadcasted_iota(jnp.int32, (C, 1), 0)
    g_prev = jnp.where(cidx == 0, 0.0, pltpu.roll(gap, 1, 0))          # gap[c-1]
    g_next = jnp.where(cidx == C - 1, 0.0, pltpu.roll(gap, C - 1, 0))  # gap[c+1]
    eca = scal_ref[1] * g_prev + scal_ref[2] * gap + scal_ref[3] * g_next
    gate = jax.nn.sigmoid(eca)                                         # (C, 1)

    # Fusion: EXT branch output + gated channel-attention features
    o_ref[0] = (exout + ca * gate).astype(o_ref.dtype)


# ----------------------------------------------------------------------------
# One-time parameter / constant preparation (hoisted out of the forward)
# ----------------------------------------------------------------------------
def _bn_affine(bn, eps=1e-5):
    scale = bn["w"] / jnp.sqrt(bn["var"] + eps)
    shift = bn["b"] - bn["mean"] * scale
    return scale, shift


def _fold_conv3x3(w, scale):
    # (Cout, Cin, 3, 3) -> (Cout, 9*Cin) matching tap order t*Cin + cin, with the
    # BN scale folded into the output-channel rows.
    cout, cin = w.shape[0], w.shape[1]
    wf = jnp.transpose(w.reshape(cout, cin, 9), (0, 2, 1)).reshape(cout, 9 * cin)
    return scale[:, None] * wf


def _round_up(v, m):
    return (v + m - 1) // m * m


def prepare_extchgap(p, H, W, compute_dtype=jnp.float32):
    """BN folding, attention-weight folding, conv merging and halo-mask precompute."""
    N = H * W
    C = p["convex_w"].shape[0]
    cd = jnp.dtype(compute_dtype)
    hp = jax.lax.Precision.HIGHEST

    # K = 9*C padded so sub-32-bit tap slabs stay sublane-tile aligned (no MXU relayout).
    sublane_pack = max(1, 4 // cd.itemsize)
    k_pad = _round_up(9 * C, 8 * sublane_pack)

    def pad_k(w):
        return jnp.pad(w, ((0, 0), (0, k_pad - w.shape[1])))

    # Halo masks: valid[t, p] == 1 iff output pixel p has an in-bounds input for tap t.
    pos = jnp.arange(N, dtype=jnp.int32)
    row, col = pos // W, pos % W
    ms = []
    for t in range(9):
        sy, sx = t // 3 - 1, t % 3 - 1
        valid = ((row + sy >= 0) & (row + sy < H) &
                 (col + sx >= 0) & (col + sx < W))
        ms.append(valid.astype(jnp.float32))
    masks = jnp.stack(ms, axis=0).astype(cd)                       # (9, N)

    cvx_s, cvx_t = _bn_affine(p["convex_bn"])
    att_s, att_t = _bn_affine(p["att_bn"])
    c1_s, c1_t = _bn_affine(p["conv1ex_bn"])
    cch_s, cch_t = _bn_affine(p["convch_bn"])

    temperature = 2.0
    wkq = jnp.dot(p["k_w"], p["q_w"], precision=hp) / temperature           # Wk Wq / T
    bkq = jnp.dot(p["k_w"], p["q_b"], precision=hp) / temperature           # Wk bq / T
    wov = att_s[:, None] * jnp.dot(p["out_w"], p["k_w"].T, precision=hp)    # bn*Wo*Wv

    # Merged convex|convch weight: (2C, k_pad), BN scales folded into the rows.
    w_cc = pad_k(jnp.concatenate([_fold_conv3x3(p["convex_w"], cvx_s),
                                  _fold_conv3x3(p["convch_w"], cch_s)], axis=0))
    w_c1 = pad_k(_fold_conv3x3(p["conv1ex_w"], c1_s))

    # Packed per-channel vectors, (2C, 3) f32:
    #   col0 = [convex shift ; convch shift]   (bias of the merged conv)
    #   col1 = [Wk bq / T    ; conv1ex shift]
    #   col2 = [att BN shift ; outconvex bias]
    vecs = jnp.stack([jnp.concatenate([cvx_t, cch_t]),
                      jnp.concatenate([bkq, c1_t]),
                      jnp.concatenate([att_t, p["outconvex_b"]])],
                     axis=1).astype(jnp.float32)

    # SMEM scalars: [CAM gamma, eca_w0, eca_w1, eca_w2]
    scalars = jnp.concatenate([p["gamma"], p["eca_w"]]).astype(jnp.float32)

    weights = (w_cc.astype(cd), wkq.astype(cd), wov.astype(cd),
               w_c1.astype(cd), p["outconvex_w"].astype(cd))
    return dict(scalars=scalars, masks=masks, vecs=vecs, weights=weights,
                compute_dtype=cd)


# ----------------------------------------------------------------------------
# Explicit VMEM footprint estimate (review item: v7x has only 64 MiB VMEM)
# ----------------------------------------------------------------------------
def _vmem_limit_bytes(C, N, k_pad, cd_itemsize):
    f32 = 4
    io = 2 * (2 * C * N * f32)                          # x + out blocks, double-buffered
    weights = (3 * C * k_pad + 3 * C * C) * cd_itemsize  # single-copy constant weights
    consts = 9 * N * cd_itemsize + 2 * C * 3 * f32 + 4 * f32
    acts = (k_pad * N * cd_itemsize                     # one tap slab live at a time
            + 10 * C * N * f32                          # conv / attention intermediates
            + 3 * C * C * f32)                          # CAM energy / attention
    need = 2 * (io + weights + consts + acts)           # 2x headroom for compiler temps
    if need <= 16 * 1024 * 1024:                        # fits every chip's default scope
        return None
    # TODO(synk): if this clamps on v7x (64 MiB physical), tile N with an online
    # softmax / two-pass GAP instead of full spatial residency.
    return int(min(need, 56 * 1024 * 1024))


# ----------------------------------------------------------------------------
# Forward (single fused pallas_call, grid over batch)
# ----------------------------------------------------------------------------
def extchgap_forward(x, prep):
    B, C, H, W = x.shape
    N = H * W
    assert N % 128 == 0, "H*W must be a multiple of 128 (lane tiling)"
    assert C % 8 == 0, "channels must be a multiple of 8 (sublane tiling)"
    w_cc, wkq, wov, w_c1, w_o = prep["weights"]
    assert w_o.shape[0] == C, "residual add requires out_channel == in_channel"
    assert prep["masks"].shape[1] == N, "prep was built for a different H, W"
    cd = prep["compute_dtype"]
    k_pad = w_cc.shape[1]

    xf = x.reshape(B, C, N)
    kernel = functools.partial(_extchgap_kernel, W=W, compute_dtype=cd)
    # Constants: one resident VMEM copy for the whole call (no per-step DMA, no
    # double-buffering of the big conv weights).
    vmem_const = pl.BlockSpec(memory_space=pltpu.MemorySpace.VMEM)

    out = pl.pallas_call(
        kernel,
        out_shape=jax.ShapeDtypeStruct((B, C, N), x.dtype),
        grid=(B,),
        in_specs=[
            pl.BlockSpec(memory_space=pltpu.MemorySpace.SMEM),   # scalars (4,)
            pl.BlockSpec((1, C, N), lambda b: (b, 0, 0)),        # x (pipelined / batch)
            vmem_const,                                          # halo masks (9, N)
            vmem_const,                                          # vecs (2C, 3)
            vmem_const,                                          # w_cc (2C, k_pad)
            vmem_const,                                          # wkq  (C, C)
            vmem_const,                                          # wov  (C, C)
            vmem_const,                                          # w_c1 (C, k_pad)
            vmem_const,                                          # w_o  (C, C)
        ],
        out_specs=pl.BlockSpec((1, C, N), lambda b: (b, 0, 0)),
        compiler_params=pltpu.CompilerParams(
            dimension_semantics=("parallel",),   # B>=2 -> both v7x TensorCores busy
            vmem_limit_bytes=_vmem_limit_bytes(C, N, k_pad, jnp.dtype(cd).itemsize),
        ),
    )(prep["scalars"], xf, prep["masks"], prep["vecs"], w_cc, wkq, wov, w_c1, w_o)
    return out.reshape(B, C, H, W)


# ----------------------------------------------------------------------------
# Parameter init (deterministic, matching the module's __init__ shapes)
# ----------------------------------------------------------------------------
def _bn_params(c):
    return dict(w=jnp.ones((c,), jnp.float32), b=jnp.zeros((c,), jnp.float32),
                mean=jnp.zeros((c,), jnp.float32), var=jnp.ones((c,), jnp.float32))


def init_params(key, cin, cout):
    ks = jax.random.split(key, 10)
    p = {}
    p["convex_w"] = 0.1 * jax.random.normal(ks[0], (cin, cin, 3, 3), jnp.float32)
    p["convex_bn"] = _bn_params(cin)
    p["q_w"] = 0.1 * jax.random.normal(ks[1], (cin, cin), jnp.float32)    # Conv2d(c,c,1)
    p["q_b"] = 0.1 * jax.random.normal(ks[2], (cin,), jnp.float32)
    p["k_w"] = 0.1 * jax.random.normal(ks[3], (cin, cin), jnp.float32)    # Conv1d(c,c,1)
    p["out_w"] = 0.1 * jax.random.normal(ks[4], (cin, cin), jnp.float32)  # outconv2dbn conv
    p["att_bn"] = _bn_params(cin)
    p["conv1ex_w"] = 0.1 * jax.random.normal(ks[5], (cin, cin, 3, 3), jnp.float32)
    p["conv1ex_bn"] = _bn_params(cin)
    p["outconvex_w"] = 0.1 * jax.random.normal(ks[6], (cout, cin), jnp.float32)
    p["outconvex_b"] = 0.1 * jax.random.normal(ks[7], (cout,), jnp.float32)
    p["convch_w"] = 0.1 * jax.random.normal(ks[8], (cin, cin, 3, 3), jnp.float32)
    p["convch_bn"] = _bn_params(cin)
    # PyTorch CAM_Module inits gamma to 0; use a nonzero value so the numeric check
    # actually exercises the CAM path.
    p["gamma"] = jnp.array([0.25], jnp.float32)
    p["eca_w"] = 0.5 * jax.random.normal(ks[9], (3,), jnp.float32)        # Conv1d(1,1,3)
    return p


# ----------------------------------------------------------------------------
# Pure-JAX reference (unfolded, for correctness check)
# ----------------------------------------------------------------------------
def extchgap_reference(x, p):
    B, C, H, W = x.shape
    hp = jax.lax.Precision.HIGHEST

    def bn(y, bnp):
        s, t = _bn_affine(bnp)
        return y * s[None, :, None, None] + t[None, :, None, None]

    def conv3(y, w):
        return jax.lax.conv_general_dilated(
            y, w, (1, 1), "SAME", dimension_numbers=("NCHW", "OIHW", "NCHW"),
            precision=hp)

    ex = jax.nn.relu(bn(conv3(x, p["convex_w"]), p["convex_bn"]))
    xf = ex.reshape(B, C, H * W)
    q = jnp.einsum("oc,bcn->bon", p["q_w"], xf, precision=hp) + p["q_b"][None, :, None]
    k = jnp.einsum("oc,bcn->bon", p["k_w"], q, precision=hp)
    s = jax.nn.softmax(k / 2.0, axis=-1)
    v = jnp.einsum("oc,bcn->bon", p["k_w"].T, s, precision=hp)
    o = jnp.einsum("oc,bcn->bon", p["out_w"], v, precision=hp)
    att = bn(o.reshape(B, C, H, W), p["att_bn"])
    ex1 = jax.nn.relu(bn(conv3(att, p["conv1ex_w"]), p["conv1ex_bn"]))
    exout = (jnp.einsum("oc,bchw->bohw", p["outconvex_w"], ex1, precision=hp)
             + p["outconvex_b"][None, :, None, None])

    ch = jax.nn.relu(bn(conv3(x, p["convch_w"]), p["convch_bn"]))
    cf = ch.reshape(B, C, H * W)
    energy = jnp.einsum("bcn,bdn->bcd", cf, cf, precision=hp)
    en = jnp.max(energy, axis=-1, keepdims=True) - energy
    attn = jax.nn.softmax(en, axis=-1)
    cam = jnp.einsum("bcd,bdn->bcn", attn, cf, precision=hp)
    ca = p["gamma"][0] * cam + cf
    gap = jnp.mean(ca, axis=-1)                              # (B, C)
    gpad = jnp.pad(gap, ((0, 0), (1, 1)))
    eca = (p["eca_w"][0] * gpad[:, :-2] + p["eca_w"][1] * gpad[:, 1:-1]
           + p["eca_w"][2] * gpad[:, 2:])
    sig = jax.nn.sigmoid(eca)
    chout = ca * sig[:, :, None]
    return exout + chout.reshape(B, C, H, W)


if __name__ == "__main__":
    key = jax.random.PRNGKey(0)
    kx, kp = jax.random.split(key)
    B, C, H, W = 2, 8, 16, 16   # in_channel == out_channel (required by the residual add)
    x = jax.random.normal(kx, (B, C, H, W), jnp.float32)
    params = init_params(kp, C, C)

    ref = extchgap_reference(x, params)

    # f32 path (strict check) -------------------------------------------------
    prep32 = prepare_extchgap(params, H, W, compute_dtype=jnp.float32)
    out32 = jax.block_until_ready(extchgap_forward(x, prep32))
    assert out32.shape == (B, C, H, W), out32.shape
    if not bool(jnp.allclose(out32, ref, atol=5e-3, rtol=5e-3)):
        raise AssertionError("f32 Pallas EXTCHGAP output mismatch vs JAX reference")

    # bf16 MXU path (valid on v5e/v6e/v7x; f32 accumulation & epilogues) -------
    prep16 = prepare_extchgap(params, H, W, compute_dtype=jnp.bfloat16)
    out16 = jax.block_until_ready(extchgap_forward(x, prep16))
    if not bool(jnp.allclose(out16, ref, atol=1.5e-1, rtol=1.5e-1)):
        raise AssertionError("bf16 Pallas EXTCHGAP output mismatch vs JAX reference")

    print("KERNEL_OK")
</pallas_src>

<mosaic_0001>
module attributes {stable_mosaic.version = 11 : i64} {
  func.func @_extchgap_kernel(%arg0: i32, %arg1: memref<4xf32, #tpu.memory_space<smem>>, %arg2: memref<1x8x256xf32, #tpu.memory_space<vmem>>, %arg3: memref<9x256xf32, #tpu.memory_space<vmem>>, %arg4: memref<16x3xf32, #tpu.memory_space<vmem>>, %arg5: memref<16x72xf32, #tpu.memory_space<vmem>>, %arg6: memref<8x8xf32, #tpu.memory_space<vmem>>, %arg7: memref<8x8xf32, #tpu.memory_space<vmem>>, %arg8: memref<8x72xf32, #tpu.memory_space<vmem>>, %arg9: memref<8x8xf32, #tpu.memory_space<vmem>>, %arg10: memref<1x8x256xf32, #tpu.memory_space<vmem>>) attributes {dimension_semantics = [#tpu.dimension_semantics<parallel>], iteration_bounds = array<i64: 2>, scalar_prefetch = 0 : i64, scratch_operands = 0 : i64, tpu.core_type = #tpu.core_type<tc>, window_params = [{transform_indices = @transform_0, window_bounds = array<i64: 4>}, {transform_indices = @transform_1, window_bounds = array<i64: 1, 8, 256>}, {pipeline_mode = #tpu.pipeline_mode<synchronous>, transform_indices = @transform_2, window_bounds = array<i64: 9, 256>}, {pipeline_mode = #tpu.pipeline_mode<synchronous>, transform_indices = @transform_3, window_bounds = array<i64: 16, 3>}, {pipeline_mode = #tpu.pipeline_mode<synchronous>, transform_indices = @transform_4, window_bounds = array<i64: 16, 72>}, {pipeline_mode = #tpu.pipeline_mode<synchronous>, transform_indices = @transform_5, window_bounds = array<i64: 8, 8>}, {pipeline_mode = #tpu.pipeline_mode<synchronous>, transform_indices = @transform_6, window_bounds = array<i64: 8, 8>}, {pipeline_mode = #tpu.pipeline_mode<synchronous>, transform_indices = @transform_7, window_bounds = array<i64: 8, 72>}, {pipeline_mode = #tpu.pipeline_mode<synchronous>, transform_indices = @transform_8, window_bounds = array<i64: 8, 8>}, {transform_indices = @transform_9, window_bounds = array<i64: 1, 8, 256>}]} {
    %c0 = arith.constant 0 : index
    %c0_0 = arith.constant 0 : index
    %0 = vector.load %arg3[%c0, %c0_0] : memref<9x256xf32, #tpu.memory_space<vmem>>, vector<9x256xf32>
    %c0_1 = arith.constant 0 : index
    %c0_2 = arith.constant 0 : index
    %1 = vector.load %arg4[%c0_1, %c0_2] : memref<16x3xf32, #tpu.memory_space<vmem>>, vector<16x3xf32>
    %c0_3 = arith.constant 0 : index
    %c0_4 = arith.constant 0 : index
    %c0_5 = arith.constant 0 : index
    %2 = vector.load %arg2[%c0_3, %c0_4, %c0_5] : memref<1x8x256xf32, #tpu.memory_space<vmem>>, vector<1x8x256xf32>
    %3 = vector.shape_cast %2 : vector<1x8x256xf32> to vector<8x256xf32>
    %c17_i32 = arith.constant 17 : i32
    %4 = tpu.dynamic_rotate %3 by %c17_i32 dim 1 : vector<8x256xf32>, i32 -> vector<8x256xf32>
    %5 = vector.extract_strided_slice %0 {offsets = [0, 0], sizes = [1, 256], strides = [1, 1]} : vector<9x256xf32> to vector<1x256xf32>
    %6 = vector.broadcast %5 : vector<1x256xf32> to vector<8x256xf32>
    %7 = arith.mulf %4, %6 : vector<8x256xf32>
    %c16_i32 = arith.constant 16 : i32
    %8 = tpu.dynamic_rotate %3 by %c16_i32 dim 1 : vector<8x256xf32>, i32 -> vector<8x256xf32>
    %9 = vector.extract_strided_slice %0 {offsets = [1, 0], sizes = [1, 256], strides = [1, 1]} : vector<9x256xf32> to vector<1x256xf32>
    %10 = vector.broadcast %9 : vector<1x256xf32> to vector<8x256xf32>
    %11 = arith.mulf %8, %10 : vector<8x256xf32>
    %c15_i32 = arith.constant 15 : i32
    %12 = tpu.dynamic_rotate %3 by %c15_i32 dim 1 : vector<8x256xf32>, i32 -> vector<8x256xf32>
    %13 = vector.extract_strided_slice %0 {offsets = [2, 0], sizes = [1, 256], strides = [1, 1]} : vector<9x256xf32> to vector<1x256xf32>
    %14 = vector.broadcast %13 : vector<1x256xf32> to vector<8x256xf32>
    %15 = arith.mulf %12, %14 : vector<8x256xf32>
    %c1_i32 = arith.constant 1 : i32
    %16 = tpu.dynamic_rotate %3 by %c1_i32 dim 1 : vector<8x256xf32>, i32 -> vector<8x256xf32>
    %17 = vector.extract_strided_slice %0 {offsets = [3, 0], sizes = [1, 256], strides = [1, 1]} : vector<9x256xf32> to vector<1x256xf32>
    %18 = vector.broadcast %17 : vector<1x256xf32> to vector<8x256xf32>
    %19 = arith.mulf %16, %18 : vector<8x256xf32>
    %c255_i32 = arith.constant 255 : i32
    %20 = tpu.dynamic_rotate %3 by %c255_i32 dim 1 : vector<8x256xf32>, i32 -> vector<8x256xf32>
    %21 = vector.extract_strided_slice %0 {offsets = [5, 0], sizes = [1, 256], strides = [1, 1]} : vector<9x256xf32> to vector<1x256xf32>
    %22 = vector.broadcast %21 : vector<1x256xf32> to vector<8x256xf32>
    %23 = arith.mulf %20, %22 : vector<8x256xf32>
    %c241_i32 = arith.constant 241 : i32
    %24 = tpu.dynamic_rotate %3 by %c241_i32 dim 1 : vector<8x256xf32>, i32 -> vector<8x256xf32>
    %25 = vector.extract_strided_slice %0 {offsets = [6, 0], sizes = [1, 256], strides = [1, 1]} : vector<9x256xf32> to vector<1x256xf32>
    %26 = vector.broadcast %25 : vector<1x256xf32> to vector<8x256xf32>
    %27 = arith.mulf %24, %26 : vector<8x256xf32>
    %c240_i32 = arith.constant 240 : i32
    %28 = tpu.dynamic_rotate %3 by %c240_i32 dim 1 : vector<8x256xf32>, i32 -> vector<8x256xf32>
    %29 = vector.extract_strided_slice %0 {offsets = [7, 0], sizes = [1, 256], strides = [1, 1]} : vector<9x256xf32> to vector<1x256xf32>
    %30 = vector.broadcast %29 : vector<1x256xf32> to vector<8x256xf32>
    %31 = arith.mulf %28, %30 : vector<8x256xf32>
    %c239_i32 = arith.constant 239 : i32
    %32 = tpu.dynamic_rotate %3 by %c239_i32 dim 1 : vector<8x256xf32>, i32 -> vector<8x256xf32>
    %33 = vector.extract_strided_slice %0 {offsets = [8, 0], sizes = [1, 256], strides = [1, 1]} : vector<9x256xf32> to vector<1x256xf32>
    %34 = vector.broadcast %33 : vector<1x256xf32> to vector<8x256xf32>
    %35 = arith.mulf %32, %34 : vector<8x256xf32>
    %36 = tpu.concatenate %7, %11, %15, %19, %3, %23, %27, %31, %35 in 0 : vector<8x256xf32>, vector<8x256xf32>, vector<8x256xf32>, vector<8x256xf32>, vector<8x256xf32>, vector<8x256xf32>, vector<8x256xf32>, vector<8x256xf32>, vector<8x256xf32> -> vector<72x256xf32>
    %c0_6 = arith.constant 0 : index
    %c0_7 = arith.constant 0 : index
    %37 = vector.load %arg5[%c0_6, %c0_7] : memref<16x72xf32, #tpu.memory_space<vmem>>, vector<16x72xf32>
    %cst = arith.constant dense<0.000000e+00> : vector<16x256xf32>
    %38 = tpu.matmul %37, %36, %cst {dimension_numbers = #tpu.dot_dimension_numbers<[1], [0], [0], [1], [0, 0, 1, 1], [], []>} : vector<16x72xf32>, vector<72x256xf32>, vector<16x256xf32> -> vector<16x256xf32>
    %39 = vector.extract_strided_slice %1 {offsets = [0, 0], sizes = [16, 1], strides = [1, 1]} : vector<16x3xf32> to vector<16x1xf32>
    %40 = vector.broadcast %39 : vector<16x1xf32> to vector<16x256xf32>
    %41 = arith.addf %38, %40 : vector<16x256xf32>
    %cst_8 = arith.constant 0.000000e+00 : f32
    %42 = vector.broadcast %cst_8 : f32 to vector<16x256xf32>
    %43 = arith.maximumf %41, %42 : vector<16x256xf32>
    %44 = vector.extract_strided_slice %43 {offsets = [0, 0], sizes = [8, 256], strides = [1, 1]} : vector<16x256xf32> to vector<8x256xf32>
    %45 = vector.extract_strided_slice %43 {offsets = [8, 0], sizes = [8, 256], strides = [1, 1]} : vector<16x256xf32> to vector<8x256xf32>
    %c0_9 = arith.constant 0 : index
    %c0_10 = arith.constant 0 : index
    %46 = vector.load %arg6[%c0_9, %c0_10] : memref<8x8xf32, #tpu.memory_space<vmem>>, vector<8x8xf32>
    %cst_11 = arith.constant dense<0.000000e+00> : vector<8x256xf32>
    %47 = tpu.matmul %46, %44, %cst_11 {dimension_numbers = #tpu.dot_dimension_numbers<[1], [0], [0], [1], [0, 0, 1, 1], [], []>} : vector<8x8xf32>, vector<8x256xf32>, vector<8x256xf32> -> vector<8x256xf32>
    %48 = vector.extract_strided_slice %1 {offsets = [0, 1], sizes = [8, 1], strides = [1, 1]} : vector<16x3xf32> to vector<8x1xf32>
    %49 = vector.broadcast %48 : vector<8x1xf32> to vector<8x256xf32>
    %50 = arith.addf %47, %49 : vector<8x256xf32>
    %cst_12 = arith.constant dense<0xFF800000> : vector<8xf32>
    %51 = vector.multi_reduction <maximumf>, %50, %cst_12 [1] : vector<8x256xf32> to vector<8xf32>
    %52 = vector.shape_cast %51 : vector<8xf32> to vector<8x1xf32>
    %53 = vector.broadcast %52 : vector<8x1xf32> to vector<8x256xf32>
    %54 = arith.subf %50, %53 : vector<8x256xf32>
    %55 = math.exp %54 : vector<8x256xf32>
    %cst_13 = arith.constant dense<0.000000e+00> : vector<8xf32>
    %56 = vector.multi_reduction <add>, %55, %cst_13 [1] : vector<8x256xf32> to vector<8xf32>
    %57 = vector.shape_cast %56 : vector<8xf32> to vector<8x1xf32>
    %58 = tpu.reciprocal %57 {approx = true} : vector<8x1xf32> -> vector<8x1xf32>
    %59 = vector.broadcast %58 : vector<8x1xf32> to vector<8x256xf32>
    %60 = arith.mulf %55, %59 : vector<8x256xf32>
    %c0_14 = arith.constant 0 : index
    %c0_15 = arith.constant 0 : index
    %61 = vector.load %arg7[%c0_14, %c0_15] : memref<8x8xf32, #tpu.memory_space<vmem>>, vector<8x8xf32>
    %cst_16 = arith.constant dense<0.000000e+00> : vector<8x256xf32>
    %62 = tpu.matmul %61, %60, %cst_16 {dimension_numbers = #tpu.dot_dimension_numbers<[1], [0], [0], [1], [0, 0, 1, 1], [], []>} : vector<8x8xf32>, vector<8x256xf32>, vector<8x256xf32> -> vector<8x256xf32>
    %63 = vector.extract_strided_slice %1 {offsets = [0, 2], sizes = [8, 1], strides = [1, 1]} : vector<16x3xf32> to vector<8x1xf32>
    %64 = vector.broadcast %63 : vector<8x1xf32> to vector<8x256xf32>
    %65 = arith.addf %62, %64 : vector<8x256xf32>
    %c17_i32_17 = arith.constant 17 : i32
    %66 = tpu.dynamic_rotate %65 by %c17_i32_17 dim 1 : vector<8x256xf32>, i32 -> vector<8x256xf32>
    %67 = vector.extract_strided_slice %0 {offsets = [0, 0], sizes = [1, 256], strides = [1, 1]} : vector<9x256xf32> to vector<1x256xf32>
    %68 = vector.broadcast %67 : vector<1x256xf32> to vector<8x256xf32>
    %69 = arith.mulf %66, %68 : vector<8x256xf32>
    %c16_i32_18 = arith.constant 16 : i32
    %70 = tpu.dynamic_rotate %65 by %c16_i32_18 dim 1 : vector<8x256xf32>, i32 -> vector<8x256xf32>
    %71 = vector.extract_strided_slice %0 {offsets = [1, 0], sizes = [1, 256], strides = [1, 1]} : vector<9x256xf32> to vector<1x256xf32>
    %72 = vector.broadcast %71 : vector<1x256xf32> to vector<8x256xf32>
    %73 = arith.mulf %70, %72 : vector<8x256xf32>
    %c15_i32_19 = arith.constant 15 : i32
    %74 = tpu.dynamic_rotate %65 by %c15_i32_19 dim 1 : vector<8x256xf32>, i32 -> vector<8x256xf32>
    %75 = vector.extract_strided_slice %0 {offsets = [2, 0], sizes = [1, 256], strides = [1, 1]} : vector<9x256xf32> to vector<1x256xf32>
    %76 = vector.broadcast %75 : vector<1x256xf32> to vector<8x256xf32>
    %77 = arith.mulf %74, %76 : vector<8x256xf32>
    %c1_i32_20 = arith.constant 1 : i32
    %78 = tpu.dynamic_rotate %65 by %c1_i32_20 dim 1 : vector<8x256xf32>, i32 -> vector<8x256xf32>
    %79 = vector.extract_strided_slice %0 {offsets = [3, 0], sizes = [1, 256], strides = [1, 1]} : vector<9x256xf32> to vector<1x256xf32>
    %80 = vector.broadcast %79 : vector<1x256xf32> to vector<8x256xf32>
    %81 = arith.mulf %78, %80 : vector<8x256xf32>
    %c255_i32_21 = arith.constant 255 : i32
    %82 = tpu.dynamic_rotate %65 by %c255_i32_21 dim 1 : vector<8x256xf32>, i32 -> vector<8x256xf32>
    %83 = vector.extract_strided_slice %0 {offsets = [5, 0], sizes = [1, 256], strides = [1, 1]} : vector<9x256xf32> to vector<1x256xf32>
    %84 = vector.broadcast %83 : vector<1x256xf32> to vector<8x256xf32>
    %85 = arith.mulf %82, %84 : vector<8x256xf32>
    %c241_i32_22 = arith.constant 241 : i32
    %86 = tpu.dynamic_rotate %65 by %c241_i32_22 dim 1 : vector<8x256xf32>, i32 -> vector<8x256xf32>
    %87 = vector.extract_strided_slice %0 {offsets = [6, 0], sizes = [1, 256], strides = [1, 1]} : vector<9x256xf32> to vector<1x256xf32>
    %88 = vector.broadcast %87 : vector<1x256xf32> to vector<8x256xf32>
    %89 = arith.mulf %86, %88 : vector<8x256xf32>
    %c240_i32_23 = arith.constant 240 : i32
    %90 = tpu.dynamic_rotate %65 by %c240_i32_23 dim 1 : vector<8x256xf32>, i32 -> vector<8x256xf32>
    %91 = vector.extract_strided_slice %0 {offsets = [7, 0], sizes = [1, 256], strides = [1, 1]} : vector<9x256xf32> to vector<1x256xf32>
    %92 = vector.broadcast %91 : vector<1x256xf32> to vector<8x256xf32>
    %93 = arith.mulf %90, %92 : vector<8x256xf32>
    %c239_i32_24 = arith.constant 239 : i32
    %94 = tpu.dynamic_rotate %65 by %c239_i32_24 dim 1 : vector<8x256xf32>, i32 -> vector<8x256xf32>
    %95 = vector.extract_strided_slice %0 {offsets = [8, 0], sizes = [1, 256], strides = [1, 1]} : vector<9x256xf32> to vector<1x256xf32>
    %96 = vector.broadcast %95 : vector<1x256xf32> to vector<8x256xf32>
    %97 = arith.mulf %94, %96 : vector<8x256xf32>
    %98 = tpu.concatenate %69, %73, %77, %81, %65, %85, %89, %93, %97 in 0 : vector<8x256xf32>, vector<8x256xf32>, vector<8x256xf32>, vector<8x256xf32>, vector<8x256xf32>, vector<8x256xf32>, vector<8x256xf32>, vector<8x256xf32>, vector<8x256xf32> -> vector<72x256xf32>
    %c0_25 = arith.constant 0 : index
    %c0_26 = arith.constant 0 : index
    %99 = vector.load %arg8[%c0_25, %c0_26] : memref<8x72xf32, #tpu.memory_space<vmem>>, vector<8x72xf32>
    %cst_27 = arith.constant dense<0.000000e+00> : vector<8x256xf32>
    %100 = tpu.matmul %99, %98, %cst_27 {dimension_numbers = #tpu.dot_dimension_numbers<[1], [0], [0], [1], [0, 0, 1, 1], [], []>} : vector<8x72xf32>, vector<72x256xf32>, vector<8x256xf32> -> vector<8x256xf32>
    %101 = vector.extract_strided_slice %1 {offsets = [8, 1], sizes = [8, 1], strides = [1, 1]} : vector<16x3xf32> to vector<8x1xf32>
    %102 = vector.broadcast %101 : vector<8x1xf32> to vector<8x256xf32>
    %103 = arith.addf %100, %102 : vector<8x256xf32>
    %cst_28 = arith.constant 0.000000e+00 : f32
    %104 = vector.broadcast %cst_28 : f32 to vector<8x256xf32>
    %105 = arith.maximumf %103, %104 : vector<8x256xf32>
    %c0_29 = arith.constant 0 : index
    %c0_30 = arith.constant 0 : index
    %106 = vector.load %arg9[%c0_29, %c0_30] : memref<8x8xf32, #tpu.memory_space<vmem>>, vector<8x8xf32>
    %cst_31 = arith.constant dense<0.000000e+00> : vector<8x256xf32>
    %107 = tpu.matmul %106, %105, %cst_31 {dimension_numbers = #tpu.dot_dimension_numbers<[1], [0], [0], [1], [0, 0, 1, 1], [], []>} : vector<8x8xf32>, vector<8x256xf32>, vector<8x256xf32> -> vector<8x256xf32>
    %108 = vector.extract_strided_slice %1 {offsets = [8, 2], sizes = [8, 1], strides = [1, 1]} : vector<16x3xf32> to vector<8x1xf32>
    %109 = vector.broadcast %108 : vector<8x1xf32> to vector<8x256xf32>
    %110 = arith.addf %107, %109 : vector<8x256xf32>
    %cst_32 = arith.constant dense<0.000000e+00> : vector<8x8xf32>
    %111 = tpu.matmul %45, %45, %cst_32 {dimension_numbers = #tpu.dot_dimension_numbers<[1], [1], [0], [0], [0, 0, 1, 0], [], []>} : vector<8x256xf32>, vector<8x256xf32>, vector<8x8xf32> -> vector<8x8xf32>
    %cst_33 = arith.constant dense<0x7F800000> : vector<8xf32>
    %112 = vector.multi_reduction <minimumf>, %111, %cst_33 [1] : vector<8x8xf32> to vector<8xf32>
    %113 = vector.shape_cast %112 : vector<8xf32> to vector<8x1xf32>
    %114 = vector.broadcast %113 : vector<8x1xf32> to vector<8x8xf32>
    %115 = arith.subf %114, %111 : vector<8x8xf32>
    %116 = math.exp %115 : vector<8x8xf32>
    %cst_34 = arith.constant dense<0.000000e+00> : vector<8xf32>
    %117 = vector.multi_reduction <add>, %116, %cst_34 [1] : vector<8x8xf32> to vector<8xf32>
    %118 = vector.shape_cast %117 : vector<8xf32> to vector<8x1xf32>
    %119 = tpu.reciprocal %118 {approx = true} : vector<8x1xf32> -> vector<8x1xf32>
    %120 = vector.broadcast %119 : vector<8x1xf32> to vector<8x8xf32>
    %121 = arith.mulf %116, %120 : vector<8x8xf32>
    %cst_35 = arith.constant dense<0.000000e+00> : vector<8x256xf32>
    %122 = tpu.matmul %121, %45, %cst_35 {dimension_numbers = #tpu.dot_dimension_numbers<[1], [0], [0], [1], [0, 0, 1, 1], [], []>} : vector<8x8xf32>, vector<8x256xf32>, vector<8x256xf32> -> vector<8x256xf32>
    %c0_36 = arith.constant 0 : index
    %123 = memref.load %arg1[%c0_36] : memref<4xf32, #tpu.memory_space<smem>>
    %124 = vector.broadcast %123 : f32 to vector<8x256xf32>
    %125 = arith.mulf %124, %122 : vector<8x256xf32>
    %126 = arith.addf %125, %45 : vector<8x256xf32>
    %cst_37 = arith.constant dense<0.000000e+00> : vector<8xf32>
    %127 = vector.multi_reduction <add>, %126, %cst_37 [1] : vector<8x256xf32> to vector<8xf32>
    %128 = vector.shape_cast %127 : vector<8xf32> to vector<8x1xf32>
    %cst_38 = arith.constant 2.560000e+02 : f32
    %129 = vector.broadcast %cst_38 : f32 to vector<8x1xf32>
    %130 = arith.divf %128, %129 : vector<8x1xf32>
    %131 = tpu.iota {dimensions = array<i32: 0>} : vector<8x1xi32>
    %c0_i32 = arith.constant 0 : i32
    %132 = vector.broadcast %c0_i32 : i32 to vector<8x1xi32>
    %133 = arith.cmpi eq, %131, %132 : vector<8x1xi32>
    %c1_i32_39 = arith.constant 1 : i32
    %134 = tpu.dynamic_rotate %130 by %c1_i32_39 dim 0 : vector<8x1xf32>, i32 -> vector<8x1xf32>
    %cst_40 = arith.constant 0.000000e+00 : f32
    %135 = vector.broadcast %cst_40 : f32 to vector<8x1xf32>
    %136 = arith.select %133, %135, %134 : vector<8x1xi1>, vector<8x1xf32>
    %c7_i32 = arith.constant 7 : i32
    %137 = vector.broadcast %c7_i32 : i32 to vector<8x1xi32>
    %138 = arith.cmpi eq, %131, %137 : vector<8x1xi32>
    %c7_i32_41 = arith.constant 7 : i32
    %139 = tpu.dynamic_rotate %130 by %c7_i32_41 dim 0 : vector<8x1xf32>, i32 -> vector<8x1xf32>
    %cst_42 = arith.constant 0.000000e+00 : f32
    %140 = vector.broadcast %cst_42 : f32 to vector<8x1xf32>
    %141 = arith.select %138, %140, %139 : vector<8x1xi1>, vector<8x1xf32>
    %c1 = arith.constant 1 : index
    %142 = memref.load %arg1[%c1] : memref<4xf32, #tpu.memory_space<smem>>
    %143 = vector.broadcast %142 : f32 to vector<8x1xf32>
    %144 = arith.mulf %143, %136 : vector<8x1xf32>
    %c2 = arith.constant 2 : index
    %145 = memref.load %arg1[%c2] : memref<4xf32, #tpu.memory_space<smem>>
    %146 = vector.broadcast %145 : f32 to vector<8x1xf32>
    %147 = arith.mulf %146, %130 : vector<8x1xf32>
    %148 = arith.addf %144, %147 : vector<8x1xf32>
    %c3 = arith.constant 3 : index
    %149 = memref.load %arg1[%c3] : memref<4xf32, #tpu.memory_space<smem>>
    %150 = vector.broadcast %149 : f32 to vector<8x1xf32>
    %151 = arith.mulf %150, %141 : vector<8x1xf32>
    %152 = arith.addf %148, %151 : vector<8x1xf32>
    %153 = arith.negf %152 : vector<8x1xf32>
    %154 = math.exp %153 : vector<8x1xf32>
    %cst_43 = arith.constant 1.000000e+00 : f32
    %155 = vector.broadcast %cst_43 : f32 to vector<8x1xf32>
    %156 = arith.addf %155, %154 : vector<8x1xf32>
    %157 = arith.divf %155, %156 : vector<8x1xf32>
    %158 = vector.broadcast %157 : vector<8x1xf32> to vector<8x256xf32>
    %159 = arith.mulf %126, %158 : vector<8x256xf32>
    %160 = arith.addf %110, %159 : vector<8x256xf32>
    %c0_44 = arith.constant 0 : index
    %c0_45 = arith.constant 0 : index
    %c0_46 = arith.constant 0 : index
    %161 = vector.load %arg10[%c0_44, %c0_45, %c0_46] : memref<1x8x256xf32, #tpu.memory_space<vmem>>, vector<1x8x256xf32>
    %162 = vector.shape_cast %161 : vector<1x8x256xf32> to vector<8x256xf32>
    %163 = vector.shape_cast %160 : vector<8x256xf32> to vector<1x8x256xf32>
    tpu.vector_store %arg10[%c0_44, %c0_45, %c0_46], %163 {strides = array<i32>} : memref<1x8x256xf32, #tpu.memory_space<vmem>>, vector<1x8x256xf32>,
    return
  }
  func.func @transform_0(%arg0: i32) -> i32 {
    %c0_i32 = arith.constant 0 : i32
    %c0_i32_0 = arith.constant 0 : i32
    return %c0_i32 : i32
  }
  func.func @transform_1(%arg0: i32) -> (i32, i32, i32) {
    %c0_i32 = arith.constant 0 : i32
    %c0_i32_0 = arith.constant 0 : i32
    %c0_i32_1 = arith.constant 0 : i32
    return %arg0, %c0_i32, %c0_i32_0 : i32, i32, i32
  }
  func.func @transform_2(%arg0: i32) -> (i32, i32) {
    %c0_i32 = arith.constant 0 : i32
    %c0_i32_0 = arith.constant 0 : i32
    %c0_i32_1 = arith.constant 0 : i32
    return %c0_i32, %c0_i32_0 : i32, i32
  }
  func.func @transform_3(%arg0: i32) -> (i32, i32) {
    %c0_i32 = arith.constant 0 : i32
    %c0_i32_0 = arith.constant 0 : i32
    %c0_i32_1 = arith.constant 0 : i32
    return %c0_i32, %c0_i32_0 : i32, i32
  }
  func.func @transform_4(%arg0: i32) -> (i32, i32) {
    %c0_i32 = arith.constant 0 : i32
    %c0_i32_0 = arith.constant 0 : i32
    %c0_i32_1 = arith.constant 0 : i32
    return %c0_i32, %c0_i32_0 : i32, i32
  }
  func.func @transform_5(%arg0: i32) -> (i32, i32) {
    %c0_i32 = arith.constant 0 : i32
    %c0_i32_0 = arith.constant 0 : i32
    %c0_i32_1 = arith.constant 0 : i32
    return %c0_i32, %c0_i32_0 : i32, i32
  }
  func.func @transform_6(%arg0: i32) -> (i32, i32) {
    %c0_i32 = arith.constant 0 : i32
    %c0_i32_0 = arith.constant 0 : i32
    %c0_i32_1 = arith.constant 0 : i32
    return %c0_i32, %c0_i32_0 : i32, i32
  }
  func.func @transform_7(%arg0: i32) -> (i32, i32) {
    %c0_i32 = arith.constant 0 : i32
    %c0_i32_0 = arith.constant 0 : i32
    %c0_i32_1 = arith.constant 0 : i32
    return %c0_i32, %c0_i32_0 : i32, i32
  }
  func.func @transform_8(%arg0: i32) -> (i32, i32) {
    %c0_i32 = arith.constant 0 : i32
    %c0_i32_0 = arith.constant 0 : i32
    %c0_i32_1 = arith.constant 0 : i32
    return %c0_i32, %c0_i32_0 : i32, i32
  }
  func.func @transform_9(%arg0: i32) -> (i32, i32, i32) {
    %c0_i32 = arith.constant 0 : i32
    %c0_i32_0 = arith.constant 0 : i32
    %c0_i32_1 = arith.constant 0 : i32
    return %arg0, %c0_i32, %c0_i32_0 : i32, i32, i32
  }
}

</mosaic_0001>

<bundles_post_ra>
// kernel: tpu_custom_call.1
= control target key start
LH: loop header
LB: loop body
LE: loop exit
PB: predicated region body
PF: predicated region fallthrough
CT: control target
= control target key end

     0   :  { %s2274_s0 = inlined_call_operand.hbm [shape: f32[4], index: 0, kind: input, shape index: {}]   ;;  %s2275_s1 = inlined_call_operand.hbm [shape: f32[2,8,256], index: 1, kind: input, shape index: {}]   ;;  %s2276_s2 = inlined_call_operand.hbm [shape: f32[9,256], index: 2, kind: input, shape index: {}]   ;;  %s2277_s3 = inlined_call_operand.vmem [shape: f32[16,3], index: 3, kind: input, shape index: {}]   ;;  %s2278_s4 = inlined_call_operand.vmem [shape: f32[16,72], index: 4, kind: input, shape index: {}]   ;;  %s2279_s5 = inlined_call_operand.vmem [shape: f32[8,8], index: 5, kind: input, shape index: {}]   ;;  %s2280_s6 = inlined_call_operand.hbm [shape: f32[8,8], index: 6, kind: input, shape index: {}]   ;;  %s2281_s7 = inlined_call_operand.vmem [shape: f32[8,72], index: 7, kind: input, shape index: {}]   ;;  %s2282_s8 = inlined_call_operand.hbm [shape: f32[8,8], index: 8, kind: input, shape index: {}]   ;;  %s2283_s9 = inlined_call_operand.hbm [shape: f32[2,8,256], index: 9, kind: output, shape index: {}]  }
   0x1   :  { %2288 = sst [smem:[#allocation18_spill]] %s2274_s0 }
   0x2   :  { %2289 = sst [smem:[#allocation19_spill]] %s2276_s2 }
   0x3   :  { %2290 = sst [smem:[#allocation20_spill]] %s2280_s6 }
   0x4   :  { %2291 = sst [smem:[#allocation21_spill]] %s2282_s8 }
   0x5   :  { %14 = vsyncpa [#allocation5], 0 }
   0x6   :  { %15 = vsyncpa [#allocation3], 0 }
   0x7   :  { %17 = vsyncpa [#allocation3 + $0x1], 0 }
   0x8   :  { %18 = vsyncpa [#allocation8], 0 }
   0x9   :  { %19 = vsyncpa [#allocation11], 0 }
   0xa   :  { %20 = vsyncpa [#allocation4], 0 }
   0xb   :  { %22 = vsyncpa [#allocation4 + $0x1], 0  ;;  %s1798_s30 = smov 0   ;;  %s1800_s10 = smov 0  }
   0xc   :  { %s1802_s11 = smov 0   ;;  %s1804_s12 = smov 0  }
   0xd LB: > { %s1728_s13 = smov [#allocation7]   ;;  %s1819_s15 = sadd.s32 4294967295, %s1726_s12   ;;  %s1726_s12 = sphi %s1804_s12, %s2317_s12   ;;  %s1722_s11 = sphi %s1802_s11, %s2316_s11   ;;  %s1718_s10 = sphi %s1800_s10, %s2315_s10   ;;  %s1714_s30 = sphi %s1798_s30, %s2314_s30  }
   0xe   : > { %s274_s14 = sshll.u32 %s1728_s13, 4  ;;  %p1374_p0 = scmp.ge.s32.totalorder %s1726_s12, 1  ;;  %s275_s14 = int_to_ptr.vmem [resolvable:$true] %s274_s14 }
   0xf   : > { %p2284_p1 = scmp.eq.s32.totalorder %s1819_s15, 0  ;;  %p253_p2 = scmp.lt.s32.totalorder %s1726_s12, 3 }
  0x10   : > { %s1729_s18 = smov [#allocation9]   ;;  %s1730_s20 = smov [#allocation10]  }
  0x11   : > { %p1824_p3 = pnand %p1374_p0, %p253_p2  ;;  %s297_s19 = sshll.u32 %s1729_s18, 4  ;;  %s298_s19 = int_to_ptr.vmem [resolvable:$true] %s297_s19 }
  0x12   : > { %s311_s21 = sshll.u32 %s1730_s20, 4  ;;  %s1544_s22 = scalar_lea.vmem %s275_s14, 512  ;;  %s1837_s21 = int_to_ptr.vmem [resolvable:$true] %s311_s21 }
  0x13   : > { %s2292_s16 = scalar_select %p1824_p3, 1, 0 }
  0x14   : > { %p1430_p5 = pneg %p1824_p3  ;;  %p1545_p8 = scmp.ne.s32.totalorder %s275_s14, %s1544_s22 }
  0x15   : > { %p1552_p11 = scmp.lt.s32.totalorder %s275_s14, %s275_s14  ;;  %p1553_p12 = scmp.lt.s32.totalorder %s1544_s22, %s1544_s22 }
  0x16   : > { %p1833_p6 = pnand %p1430_p5, %p2284_p1 }
  0x17   : > { %p1554_p13 = por %p1553_p12, %p1552_p11 }
  0x18   : > { %p1535_p7 = pneg %p1833_p6 }
  0x1a   : > { %p1547_p9 = pnand %p1545_p8, %p1535_p7 }
  0x1c   : > { %p1548_p10 = pneg %p1547_p9 }
  0x1e   : > { %p1555_p0 = pnand %p1554_p13, %p1548_p10 }
  0x20   : > { %1558 = shalt.err (!%p1555_p0)
}
  0x21   : > { %s1731_s23 = smov 256   ;;  %s1732_s24 = smov 16  }
  0x22   : > { %s2294_s2 = sld [smem:[#allocation19_spill]]  ;;  %s1733_s27 = smov [#allocation2]  }
  0x23   : > { %s2295_s0 = sld [smem:[#allocation18_spill]]  ;;  %s1581_s13 = scalar_lea.vmem %s298_s19, 128 }
  0x24   : > { %p1582_p2 = scmp.ne.s32.totalorder %s298_s19, %s1581_s13  ;;  %p1589_p9 = scmp.lt.s32.totalorder %s298_s19, %s298_s19 }
  0x25   : > { %p1590_p10 = scmp.lt.s32.totalorder %s1581_s13, %s1581_s13 }
  0x26   : > { %p1584_p5 = pnand %p1582_p2, %p1535_p7 }
  0x27   : > { %p1591_p11 = por %p1590_p10, %p1589_p9 }
  0x28   : > { %1436 = dma.hbm_to_vmem [thread:$0]  (!%p1833_p6), %s2294_s2, 512, %s275_s14, [#allocation8], %s1731_s23, %s1731_s23, %s1732_s24  }
  0x29   : > { %1433 = dma.hbm_to_smem (!%p1833_p6), %s2295_s0, 16, %s1733_s27, [#allocation5]  }
  0x2a   : > { %p1585_p8 = pneg %p1584_p5 }
  0x2c   : > { %p1592_p12 = pnand %p1591_p11, %p1585_p8 }
  0x2e   : > { %1595 = shalt.err (!%p1592_p12)
}
  0x2f   : > { %s2296_s6 = sld [smem:[#allocation20_spill]]  ;;  %s1607_s20 = scalar_lea.vmem %s1837_s21, 128 }
  0x30   : > { %p1608_p13 = scmp.ne.s32.totalorder %s1837_s21, %s1607_s20  ;;  %p1615_p5 = scmp.lt.s32.totalorder %s1837_s21, %s1837_s21 }
  0x31   : > { %p1616_p8 = scmp.lt.s32.totalorder %s1607_s20, %s1607_s20 }
  0x32   : > { %p1610_p0 = pnand %p1608_p13, %p1535_p7 }
  0x33   : > { %p1617_p9 = por %p1616_p8, %p1615_p5 }
  0x34   : > { %p1611_p2 = pneg %p1610_p0 }
  0x35   : > { %1439 = dma.hbm_to_vmem [thread:$0]  (!%p1833_p6), %s2296_s6, 128, %s298_s19, [#allocation8]  }
  0x36   : > { %p1618_p10 = pnand %p1617_p9, %p1611_p2 }
  0x38   : > { %1621 = shalt.err (!%p1618_p10)
}
  0x39   : > { %s2297_s8 = sld [smem:[#allocation21_spill]]  ;;  %s1373_s17 = sadd.s32 4294967294, %s1726_s12  }
  0x3a   : > { %s1877_s19 = sadd.s32 1, %s1726_s12   ;;  %s56_s25 = sadd.s32 1, %s1722_s11 }
  0x3b   : > { %s53_s24 = ssub.s32 %s1726_s12, %s1877_s19  ;;  %p63_p11 = scmp.ne.s32.totalorder %s1722_s11, %s1718_s10 }
  0x3c   : > { %p54_p7 = scmp.eq.s32.totalorder %s53_s24, 0  ;;  %p64_p12 = scmp.eq.s32.totalorder %s1726_s12, 0 }
  0x3d   : > { %p69_p13 = scmp.ne.s32.totalorder %s1718_s10, %s1714_s30  ;;  %p240_p2 = scmp.eq.s32.totalorder %s1819_s15, 1 }
  0x3e   : > { %s1888_s26 = scalar_select %p54_p7, %s1722_s11, %s56_s25  }
  0x3f   : > { %1442 = dma.hbm_to_vmem [thread:$0]  (!%p1833_p6), %s2297_s8, 128, %s1837_s21, [#allocation11]  }
  0x40   : > { %p1890_p0 = por %p64_p12, %p63_p11  ;;  %p1896_p6 = por %p2284_p1, %p69_p13 }
  0x41   : > { %p246_p5 = scmp.eq.s32.totalorder %s1373_s17, 1  ;;  %p1455_p8 = scmp.lt.s32.totalorder %s1726_s12, 2 }
  0x42   : > { %s2299_s21 = scalar_select %p1896_p6, 1, 0 }
  0x43   : > { %s322_s28 = sand.u32 1, %s1722_s11   ;;  %p1903_p9 = por %p240_p2, %p63_p11 }
  0x44   : > { %p1907_p10 = por %p246_p5, %p69_p13  ;;  %s1380_s14 = sshll.u32 %s322_s28, 4 }
  0x45   : > { %s2300_s29 = scalar_select %p1903_p9, 1, 0 }
  0x46   : > { %s2301_s13 = scalar_select %p1907_p10, 1, 0 }
  0x47   : > { %s1408_s18 = sshll.u32 %s1726_s12, 8  ;;  %s326_s17 = scalar_lea.vmem [#allocation6], %s1380_s14 }
  0x48   : > { %s1915_s23 = scalar_lea.hbm %s2275_s1, %s1408_s18  ;;  %s334_s24 = sshll.u32 %s326_s17, 4  ;;  %s335_s24 = int_to_ptr.vmem [resolvable:$true] %s334_s24 }
  0x49   : > { %p1919_p7 = pnand %p1455_p8, %p1890_p0  ;;  %s323_s0 = scalar_lea.sflag [#allocation3], %s322_s28 }
  0x4a   : > { %s1622_s2 = scalar_lea.hbm %s1915_s23, 256  ;;  %s1627_s22 = scalar_lea.hbm %s2275_s1, 512 }
  0x4b   : > { %p1623_p11 = scmp.ne.s32.totalorder %s1915_s23, %s1622_s2  ;;  %p1624_p12 = pneg %p1919_p7 }
  0x4c   : > { %p1628_p5 = scmp.lt.s32.totalorder %s1915_s23, %s2275_s1  ;;  %p1629_p0 = scmp.lt.s32.totalorder %s1627_s22, %s1622_s2 }
  0x4d   : > { %p1625_p13 = pnand %p1624_p12, %p1623_p11 }
  0x4e   : > { %p1630_p8 = por %p1629_p0, %p1628_p5 }
  0x4f   : > { %p1626_p2 = pneg %p1625_p13 }
  0x51   : > { %p1631_p4 = pnand %p1630_p8, %p1626_p2 }
  0x53   : > { %1634 = shalt.err (!%p1631_p4)
}
  0x54   : > { %s1635_s27 = scalar_lea.vmem %s335_s24, 256  ;;  %s1734_s28 = smov [#allocation6]  }
  0x55   : > { %p1636_p1 = scmp.ne.s32.totalorder %s335_s24, %s1635_s27  ;;  %s1640_s6 = sshll.u32 %s1734_s28, 4  ;;  %s1641_s6 = int_to_ptr.vmem [resolvable:$false] %s1640_s6 }
  0x56   : > { %s1642_s8 = scalar_lea.vmem %s1641_s6, 512  ;;  %p1643_p11 = scmp.lt.s32.totalorder %s335_s24, %s1641_s6 }
  0x57   : > { %p1638_p10 = pnand %p1636_p1, %p1624_p12  ;;  %p1644_p13 = scmp.lt.s32.totalorder %s1642_s8, %s1635_s27 }
  0x59   : > { %p1639_p9 = pneg %p1638_p10  ;;  %p1645_p6 = por %p1644_p13, %p1643_p11 }
  0x5b   : > { %p1646_p3 = pnand %p1645_p6, %p1639_p9 }
  0x5d   : > { %1649 = shalt.err (!%p1646_p3)
}
  0x5e   : > { %1446 = dma.hbm_to_vmem [thread:$0]  (!%p1919_p7), %s1915_s23, 256, %s335_s24, %s323_s0  }
  0x5f   : > { %p2303_p2 = scmp.ne.s32.totalorder %s2292_s16, 0 }
  0x60   : > { %p2304_p4 = scmp.eq.s32.totalorder (!%p2303_p2), %s1819_s15, 0 }
  0x61   : > { %343 = sbr.rel (%p2303_p2) target bundleno = 2374 (0x946), region = 56 }
  0x66   : > { %1693 = dma.done.wait (%p2304_p4), [#allocation5], 16   ;;  %p2305_p1 = pmov %p2304_p4 }
  0x67   : > { %s1944_s2 = sand.u32 1, %s1718_s10   ;;  %p2306_p3 = scmp.ne.s32.totalorder %s2299_s21, 0 }
  0x68   : > { %1695 = vsyncadd (%p2305_p1), [#allocation5], 4294967280  ;;  %s1385_s6 = sshll.u32 %s1944_s2, 4  ;;  %s350_s8 = scalar_lea.sflag [#allocation3], %s1944_s2 }
  0x69   : > { %s353_s0 = scalar_lea.vmem [#allocation6], %s1385_s6 }
  0x6a   : > { %1697 = dma.done.wait (%p2306_p3), %s350_s8, 256  }
  0x6b   : > { %1699 = vsyncadd (%p2306_p3), %s350_s8, 4294967040  ;;  %p2307_p6 = pmov %p2305_p1 }
  0x6c   : > { %p2308_p9 = pmov %p2305_p1 }
  0x6d   : > { %1701 = dma.done.wait (%p2307_p6), [#allocation8], 640  }
  0x6e   : > { %1703 = vsyncadd (%p2308_p9), [#allocation8], 4294966656  ;;  %p2309_p10 = pmov %p2305_p1 }
  0x6f   : > { %p2310_p7 = pmov %p2305_p1 }
  0x70   : > { %1705 = dma.done.wait (%p2309_p10), [#allocation11], 128  }
  0x71   : > { %1707 = vsyncadd (%p2310_p7), [#allocation11], 4294967168 }
  0x72   : > { %370 = sfence }
  0x73   : > { %v1962_v0 = vld [vmem:[%s353_s0] sm:$0xff]  ;;  %s1735_s16 = smov 112   ;;  %s1736_s21 = smov 111   ;;  %v1968_v1 = vld [vmem:[%s353_s0 + $0x8] sm:$0xff]  ;;  %v1740_v2 = vmov 0.0   ;;  %v1742_v3 = vmov 0   ;;  %v413_v5 = vlaneseq }
  0x74   : > { %513 = vrot.lane.b32.xlu1 %v1962_v0, %s1735_s16  ;;  %530 = vrot.lane.b32.xlu0 %v1962_v0, %s1736_s21  ;;  %s1737_s23 = smov 113   ;;  %s1738_s24 = smov 127   ;;  %v2004_v4 = vld [vmem:[%s2277_s3] sm:$0xff]  ;;  %v2014_v12 = vld [vmem:[#allocation7 + $0x8] sm:$0xff]  ;;  %v2019_v14 = vld [vmem:[#allocation7 + $0x18] ss:$0 sm:$0xff] }
  0x75   : > { %s1739_s25 = smov 1   ;;  %630 = vmatprep.mubr.f32.mxu0 %v1740_v2  ;;  %720 = vmatprep.mubr.f32.mxu1 %v1740_v2  ;;  %s1741_s18 = smov 15   ;;  %v2007_v6 = vshrl.u32 %v413_v5, 7  ;;  %v2009_v7 = vand.u32 127, %v413_v5  ;;  %v2012_v11 = vld [vmem:[#allocation7] sm:$0xff]  ;;  %vm559_vm8 = vcmask 588800  }
  0x76   : > { %1511 = vset.pattern.permute.xlu0 %v1742_v3  ;;  %s1743_s20 = smov 16   ;;  %s1744_s22 = smov 17   ;;  %v2021_v15 = vld [vmem:[#allocation7 + $0x10] ss:$0 sm:$0xff]  ;;  %vm652_vm9 = vcmask 64512  }
  0x77   : > { %v522_v10 = vsub.s32 7, %v2007_v6  ;;  %v505_v13 = vsub.s32 6, %v2007_v6  ;;  %vm517_vm0 = vcmp.lt.s32.totalorder %v2009_v7, 112  ;;  %vm534_vm1 = vcmp.lt.s32.totalorder %v2009_v7, 111  ;;  %s1248_s27 = scalar_lea.sflag [#allocation4], %s1944_s2  ;;  %p2311_p5 = scmp.ne.s32.totalorder %s2300_s29, 0 }
  0x78   : > { %515 = vrot.lane.b32.xlu1 %v1968_v1, %s1735_s16  ;;  %532 = vrot.lane.b32.xlu0 %v1968_v1, %s1736_s21  ;;  %vm500_vm2 = vcmp.lt.s32.totalorder %v2009_v7, 113  ;;  %v488_v20 = vsub.s32 5, %v2007_v6  ;;  %vm483_vm3 = vcmp.lt.s32.totalorder %v2009_v7, 127  ;;  %v471_v35 = vsub.s32 3, %v2007_v6 }
  0x79   : > { %v2024_v17 = vrot.slane %v2012_v11, %v522_v10  ;;  %v2027_v18 = vrot.slane %v2014_v12, %v522_v10  ;;  %v2036_v23 = vrot.slane %v2012_v11, %v505_v13  ;;  %v2043_v26 = vrot.slane %v2014_v12, %v505_v13 }
  0x7a   : > { %v2058_v38 = vrot.slane %v2012_v11, %v488_v20  ;;  %v2061_v39 = vrot.slane %v2014_v12, %v488_v20  ;;  %vm466_vm4 = vcmp.lt.s32.totalorder %v2009_v7, 1  ;;  %v454_v44 = vsub.s32 2, %v2007_v6 }
  0x7b   : > { %v2072_v47 = vrot.slane %v2012_v11, %v471_v35  ;;  %v2075_v48 = vrot.slane %v2014_v12, %v471_v35  ;;  %vm449_vm5 = vcmp.lt.s32.totalorder %v2009_v7, 15  ;;  %v437_v53 = vsub.s32 1, %v2007_v6 }
  0x7c   : > { %498 = vrot.lane.b32.xlu1 %v1968_v1, %s1737_s23  ;;  %496 = vrot.lane.b32.xlu0 %v1962_v0, %s1737_s23  ;;  %v2087_v56 = vrot.slane %v2012_v11, %v454_v44  ;;  %v2090_v57 = vrot.slane %v2014_v12, %v454_v44  ;;  %vm432_vm6 = vcmp.lt.s32.totalorder %v2009_v7, 16  ;;  %v420_v5 = vsub.s32 0, %v2007_v6 }
  0x7d   : > { %v2099_v62 = vrot.slane %v2012_v11, %v437_v53  ;;  %vm415_vm7 = vcmp.lt.s32.totalorder %v2009_v7, 17  ;;  %vm1213_vm10 = vcmp.eq.s32.totalorder %v2007_v6, 0  ;;  %vm1216_vm11 = vcmp.eq.s32.totalorder %v2007_v6, 7 }
  0x7e   : > { %v2115_v20 = vrot.slane %v2012_v11, %v420_v5  ;;  %v547_v11 = vld [vmem:[%s2278_s4] sm:$0xff] }
  0x80   : > { %481 = vrot.lane.b32.xlu1 %v1968_v1, %s1738_s24  ;;  %479 = vrot.lane.b32.xlu0 %v1962_v0, %s1738_s24 }
  0x84   : > { %464 = vrot.lane.b32.xlu1 %v1968_v1, %s1739_s25  ;;  %462 = vrot.lane.b32.xlu0 %v1962_v0, %s1739_s25 }
  0x88   : > { %447 = vrot.lane.b32.xlu1 %v1968_v1, %s1741_s18  ;;  %445 = vrot.lane.b32.xlu0 %v1962_v0, %s1741_s18 }
  0x8c   : > { %430 = vrot.lane.b32.xlu1 %v1968_v1, %s1743_s20  ;;  %428 = vrot.lane.b32.xlu0 %v1962_v0, %s1743_s20 }
  0x90   : > { %411 = vrot.lane.b32.xlu1 %v1968_v1, %s1744_s22  ;;  %409 = vrot.lane.b32.xlu0 %v1962_v0, %s1744_s22 }
  0x94   : > { %551 = vperm.xlu0 %1511, %v2004_v4  }
  0xe6   : > { %v514_v8 = vpop.permute.xlu1 %513  ;;  %v531_v9 = vpop.permute.xlu0 %530 }
  0xea   : > { %v516_v16 = vpop.permute.xlu1 %515  ;;  %v533_v19 = vpop.permute.xlu0 %532 }
  0xeb   : > { %v519_v21 = vsel %vm517_vm0, %v516_v16, %v514_v8  ;;  %v535_v22 = vsel %vm534_vm1, %v531_v9, %v533_v19  ;;  %v536_v24 = vsel %vm534_vm1, %v533_v19, %v531_v9  ;;  %v518_v25 = vsel %vm517_vm0, %v514_v8, %v516_v16 }
  0xec   : > { %v546_v27 = vmul.f32 %v2019_v14, %v536_v24  ;;  %v545_v28 = vmul.f32 %v2021_v15, %v535_v22  ;;  %v529_v29 = vmul.f32 %v2027_v18, %v519_v21  ;;  %v528_v32 = vmul.f32 %v2024_v17, %v518_v25 }
  0xed   : > { %v2118_v21 = vrot.slane %v2014_v12, %v420_v5 }
  0xee   : > { %v499_v30 = vpop.permute.xlu1 %498  ;;  %v497_v31 = vpop.permute.xlu0 %496  ;;  %580 = vmatprep.subr.mxu0 %v546_v27 }
  0xef   : > { %v501_v33 = vsel %vm500_vm2, %v497_v31, %v499_v30  ;;  %v502_v34 = vsel %vm500_vm2, %v499_v30, %v497_v31  ;;  %581 = vmatpush1.msra.mxu0 %v545_v28 }
  0xf0   : > { %v511_v36 = vmul.f32 %v2036_v23, %v501_v33  ;;  %v512_v37 = vmul.f32 %v2043_v26, %v502_v34  ;;  %582 = vmatprep.subr.mxu0 %v529_v29 }
  0xf1   : > { %583 = vmatpush1.msra.mxu0 %v528_v32 }
  0xf2   : > { %v482_v40 = vpop.permute.xlu1 %481  ;;  %v480_v41 = vpop.permute.xlu0 %479  ;;  %584 = vmatprep.subr.mxu0 %v512_v37  ;;  %v647_v37 = vld [vmem:[%s2279_s5] sm:$0xff] }
  0xf3   : > { %v484_v42 = vsel %vm483_vm3, %v480_v41, %v482_v40  ;;  %v485_v43 = vsel %vm483_vm3, %v482_v40, %v480_v41  ;;  %585 = vmatpush1.msra.mxu0 %v511_v36 }
  0xf4   : > { %v494_v45 = vmul.f32 %v2058_v38, %v484_v42  ;;  %v495_v46 = vmul.f32 %v2061_v39, %v485_v43 }
  0xf6   : > { %v465_v49 = vpop.permute.xlu1 %464  ;;  %v463_v50 = vpop.permute.xlu0 %462  ;;  %586 = vmatprep.subr.mxu0 %v495_v46 }
  0xf7   : > { %v467_v51 = vsel %vm466_vm4, %v463_v50, %v465_v49  ;;  %v468_v52 = vsel %vm466_vm4, %v465_v49, %v463_v50  ;;  %587 = vmatpush1.msra.mxu0 %v494_v45 }
  0xf8   : > { %v477_v54 = vmul.f32 %v2072_v47, %v468_v52  ;;  %v478_v55 = vmul.f32 %v2075_v48, %v467_v51  ;;  %588 = vmatprep.subr.mxu0 %v1968_v1 }
  0xf9   : > { %589 = vmatpush1.msra.mxu0 %v1962_v0  ;;  %v2104_v0 = vrot.slane %v2014_v12, %v437_v53  ;;  %v1745_v12 = vmov 1  }
  0xfa   : > { %v448_v58 = vpop.permute.xlu1 %447  ;;  %v446_v59 = vpop.permute.xlu0 %445  ;;  %590 = vmatprep.subr.mxu0 %v478_v55  ;;  %1512 = vset.pattern.permute.xlu1 %v1745_v12 }
  0xfb   : > { %v450_v60 = vsel %vm449_vm5, %v446_v59, %v448_v58  ;;  %v451_v61 = vsel %vm449_vm5, %v448_v58, %v446_v59  ;;  %591 = vmatpush1.msra.mxu0 %v477_v54  ;;  %649 = vperm.xlu1 %1512, %v2004_v4   ;;  %v548_v58 = vld [vmem:[%s2278_s4 + $0x8] sm:$0xff]  ;;  %v1746_v59 = vmov 2  }
  0xfc   : > { %v460_v63 = vmul.f32 %v2087_v56, %v451_v61  ;;  %v461_v1 = vmul.f32 %v2090_v57, %v450_v60  ;;  %1513 = vset.pattern.permute.xlu0 %v1746_v59  ;;  %v2146_v60 = vld [vmem:[%s2277_s3 + $0x8] sm:$0xff] }
  0xfe   : > { %v431_v8 = vpop.permute.xlu1 %430  ;;  %v429_v9 = vpop.permute.xlu0 %428  ;;  %592 = vmatprep.subr.mxu0 %v461_v1 }
  0xff   : > { %v433_v10 = vsel %vm432_vm6, %v429_v9, %v431_v8  ;;  %v434_v13 = vsel %vm432_vm6, %v431_v8, %v429_v9  ;;  %593 = vmatpush1.msra.mxu0 %v460_v63  ;;  %1516 = vset.pattern.permute.xlu1 %v1746_v59  ;;  %v742_v8 = vld [vmem:[#allocation9] sm:$0xff] }
 0x100   : > { %v443_v16 = vmul.f32 %v2099_v62, %v434_v13  ;;  %v444_v19 = vmul.f32 %v2104_v0, %v433_v10 }
 0x102   : > { %v412_v22 = vpop.permute.xlu1 %411  ;;  %v410_v24 = vpop.permute.xlu0 %409  ;;  %594 = vmatprep.subr.mxu0 %v444_v19 }
 0x103   : > { %v416_v25 = vsel %vm415_vm7, %v410_v24, %v412_v22  ;;  %v417_v27 = vsel %vm415_vm7, %v412_v22, %v410_v24  ;;  %595 = vmatpush1.msra.mxu0 %v443_v16 }
 0x104   : > { %v426_v28 = vmul.f32 %v2115_v20, %v417_v27  ;;  %v427_v29 = vmul.f32 %v2118_v21, %v416_v25 }
 0x106   : > { %596 = vmatprep.subr.mxu0 %v427_v29 }
 0x107   : > { %597 = vmatpush1.msra.mxu0 %v426_v28 }
 0x108   : > { %1392 = vmatmul.mubr.msk.f32.vlgmr.msra.gmra.mxu0 %vm559_vm8, %v547_v11 }
 0x109   : > { %636 = vmatprep.mubr.f32.mxu0 %v1740_v2 }
 0x10c   : > { %1393 = vmatmul.mubr.msk.f32.gmra.mxu0 %vm559_vm8, %v548_v58 }
 0x10d   : > { %1038 = vmatprep.mubr.f32.mxu0 %v1740_v2 }
 0x10f   : > { %v552_v30 = vpop.permute.xlu0 %551 }
 0x176   : > { %v650_v40 = vpop.permute.xlu1 %649 }
 0x1c8   : > { %v632_v31 = vpop.f32.mrf.mxu0 }
 0x1c9   : > { %v633_v32 = vadd.f32 %v632_v31, %v552_v30 }
 0x1ca   : > { %v634_v33 = vpop.f32.mrf.mxu0 }
 0x1cb   : > { %v635_v34 = vadd.f32 %v634_v33, %v552_v30  ;;  %v643_v36 = vmax.f32 %v633_v32, 0.0 }
 0x1cd   : > { %v644_v35 = vmax.f32 %v635_v34, 0.0 }
 0x1cf   : > { %686 = vmatprep.subr.mxu1 %v644_v35 }
 0x1d0   : > { %687 = vmatpush1.msra.mxu1 %v643_v36 }
 0x1d1   : > { %1394 = vmatmul.mubr.msk.f32.vlgmr.msra.gmra.mxu1 %vm652_vm9, %v647_v37 }
 0x1d2   : > { %814 = vmatprep.mubr.f32.mxu1 %v1740_v2 }
 0x291   : > { %v722_v41 = vpop.f32.mrf.mxu1 }
 0x292   : > { %v723_v43 = vadd.f32 %v722_v41, %v650_v40 }
 0x293   : > { %v724_v42 = vpop.f32.mrf.mxu1 }
 0x294   : > { %v725_v44 = vadd.f32 %v724_v42, %v650_v40 }
 0x296   : > { %v727_v45 = vmax.f32 %v723_v43, %v725_v44 }
 0x298   : > { %728 = vmax.xlane.f32.xlu1 %v727_v45 }
 0x321   : > { %v729_v46 = vpop.xlane.xlu1 %728 }
 0x322   : > { %v730_v49 = vsub.f32 %v723_v43, %v729_v46  ;;  %v731_v50 = vsub.f32 %v725_v44, %v729_v46 }
 0x324   : > { %v732_v51 = vmul.f32 1.442695, %v730_v49  ;;  %v734_v52 = vmul.f32 1.442695, %v731_v50 }
 0x326   : > { %1519 = vpow2.f32 %v732_v51 }
 0x327   : > { %1521 = vpow2.f32 %v734_v52 }
 0x333   : > { %v1520_v53 = vpop.eup %1519 }
 0x334   : > { %v1522_v54 = vpop.eup %1521 }
 0x335   : > { %v736_v55 = vadd.f32 %v1522_v54, %v1520_v53 }
 0x337   : > { %737 = vadd.xlane.f32.xlu0 %v736_v55 }
 0x34d   : > { %744 = vperm.xlu0 %1513, %v2004_v4  }
 0x351   : > { %1514 = vset.pattern.permute.xlu0 %v1742_v3 }
 0x352   : > { %556 = vperm.xlu0 %1514, %v2146_v60  }
 0x356   : > { %1515 = vset.pattern.permute.xlu0 %v1745_v12 }
 0x3c0   : > { %v738_v61 = vpop.xlane.xlu0 %737 }
 0x3c1   : > { %1523 = vrcp.f32 %v738_v61 }
 0x3c8   : > { %v745_v4 = vpop.permute.xlu0 %744 }
 0x3cd   : > { %v557_v37 = vpop.permute.xlu0 %556 }
 0x3ce   : > { %v1524_v63 = vpop.eup %1523 }
 0x3cf   : > { %v741_v1 = vmul.f32 %v1524_v63, %v1522_v54  ;;  %v740_v5 = vmul.f32 %v1524_v63, %v1520_v53 }
 0x3d1   : > { %780 = vmatprep.subr.mxu1 %v741_v1 }
 0x3d2   : > { %781 = vmatpush1.msra.mxu1 %v740_v5 }
 0x3d3   : > { %1395 = vmatmul.mubr.msk.f32.vlgmr.msra.gmra.mxu1 %vm652_vm9, %v742_v8 }
 0x3d4   : > { %957 = vmatprep.mubr.f32.mxu1 %v1740_v2 }
 0x493   : > { %v816_v9 = vpop.f32.mrf.mxu1 }
 0x494   : > { %v817_v10 = vadd.f32 %v816_v9, %v745_v4 }
 0x495   : > { %v818_v13 = vpop.f32.mrf.mxu1 }
 0x496   : > { %845 = vrot.lane.b32.xlu0 %v817_v10, %s1739_s25  ;;  %877 = vrot.lane.b32.xlu1 %v817_v10, %s1736_s21  ;;  %v819_v16 = vadd.f32 %v818_v13, %v745_v4 }
 0x49a   : > { %829 = vrot.lane.b32.xlu0 %v817_v10, %s1743_s20  ;;  %869 = vrot.lane.b32.xlu1 %v817_v10, %s1735_s16 }
 0x49e   : > { %821 = vrot.lane.b32.xlu0 %v817_v10, %s1744_s22  ;;  %861 = vrot.lane.b32.xlu1 %v817_v10, %s1737_s23 }
 0x4a2   : > { %853 = vrot.lane.b32.xlu1 %v817_v10, %s1738_s24 }
 0x4a6   : > { %837 = vrot.lane.b32.xlu1 %v817_v10, %s1741_s18 }
 0x4aa   : > { %879 = vrot.lane.b32.xlu1 %v819_v16, %s1736_s21 }
 0x4ae   : > { %871 = vrot.lane.b32.xlu1 %v819_v16, %s1735_s16 }
 0x4b2   : > { %863 = vrot.lane.b32.xlu1 %v819_v16, %s1737_s23  ;;  %s1200_s23 = sld [smem:[#allocation2]] }
 0x4b6   : > { %855 = vrot.lane.b32.xlu1 %v819_v16, %s1738_s24  ;;  %s1399_s24 = sld [smem:[#allocation2 + $0x1]] }
 0x4ba   : > { %847 = vrot.lane.b32.xlu1 %v819_v16, %s1739_s25  ;;  %s1400_s25 = sld [smem:[#allocation2 + $0x2]] }
 0x4be   : > { %839 = vrot.lane.b32.xlu1 %v819_v16, %s1741_s18  ;;  %s1401_s18 = sld [smem:[#allocation2 + $0x3]] }
 0x4c2   : > { %831 = vrot.lane.b32.xlu1 %v819_v16, %s1743_s20  ;;  %s1409_s20 = sshll.u32 %s1819_s15, 8 }
 0x4c3   : > { %s2237_s17 = scalar_lea.hbm %s2283_s9, %s1409_s20 }
 0x4c6   : > { %823 = vrot.lane.b32.xlu1 %v819_v16, %s1744_s22  ;;  %s400_s22 = scalar_lea.vmem [#allocation12], %s1385_s6  ;;  %s1747_s6 = smov [#allocation12]  }
 0x4c7   : > { %s1262_s8 = sshll.u32 %s400_s22, 4  ;;  %s1654_s28 = sshll.u32 %s1747_s6, 4  ;;  %s1263_s8 = int_to_ptr.vmem [resolvable:$true] %s1262_s8  ;;  %s1655_s28 = int_to_ptr.vmem [resolvable:$false] %s1654_s28 }
 0x4c8   : > { %s1650_s15 = scalar_lea.vmem %s1263_s8, 256  ;;  %s1656_s16 = scalar_lea.vmem %s1655_s28, 512 }
 0x4c9   : > { %p1651_p12 = scmp.ne.s32.totalorder %s1263_s8, %s1650_s15  ;;  %p1657_p11 = scmp.lt.s32.totalorder %s1263_s8, %s1655_s28 }
 0x4ca   : > { %p1658_p13 = scmp.lt.s32.totalorder %s1656_s16, %s1650_s15 }
 0x4cb   : > { %p1652_p0 = pnand %p1651_p12, %p2311_p5 }
 0x4cc   : > { %p1659_p2 = por %p1658_p13, %p1657_p11 }
 0x4cd   : > { %p1653_p8 = pneg %p1652_p0 }
 0x4cf   : > { %p1660_p4 = pnand %p1659_p2, %p1653_p8 }
 0x508   : > { %v878_v19 = vpop.permute.xlu1 %877  ;;  %v846_v45 = vpop.permute.xlu0 %845 }
 0x50c   : > { %v870_v22 = vpop.permute.xlu1 %869  ;;  %v830_v53 = vpop.permute.xlu0 %829 }
 0x510   : > { %v862_v24 = vpop.permute.xlu1 %861  ;;  %v822_v1 = vpop.permute.xlu0 %821 }
 0x514   : > { %v854_v25 = vpop.permute.xlu1 %853 }
 0x518   : > { %v838_v27 = vpop.permute.xlu1 %837 }
 0x51c   : > { %v880_v28 = vpop.permute.xlu1 %879 }
 0x51d   : > { %v881_v29 = vsel %vm534_vm1, %v878_v19, %v880_v28  ;;  %v882_v11 = vsel %vm534_vm1, %v880_v28, %v878_v19 }
 0x51e   : > { %v883_v12 = vmul.f32 %v2021_v15, %v881_v29  ;;  %v884_v30 = vmul.f32 %v2019_v14, %v882_v11 }
 0x520   : > { %907 = vmatprep.subr.mxu1 %v884_v30  ;;  %v872_v31 = vpop.permute.xlu1 %871  ;;  %v966_v30 = vld [vmem:[#allocation10] sm:$0xff] }
 0x521   : > { %v873_v32 = vsel %vm517_vm0, %v870_v22, %v872_v31  ;;  %v874_v33 = vsel %vm517_vm0, %v872_v31, %v870_v22  ;;  %908 = vmatpush1.msra.mxu1 %v883_v12 }
 0x522   : > { %v875_v34 = vmul.f32 %v873_v32, %v2024_v17  ;;  %v876_v35 = vmul.f32 %v874_v33, %v2027_v18 }
 0x524   : > { %909 = vmatprep.subr.mxu1 %v876_v35  ;;  %v864_v36 = vpop.permute.xlu1 %863 }
 0x525   : > { %v865_v15 = vsel %vm500_vm2, %v862_v24, %v864_v36  ;;  %v866_v14 = vsel %vm500_vm2, %v864_v36, %v862_v24  ;;  %910 = vmatpush1.msra.mxu1 %v875_v34 }
 0x526   : > { %v867_v40 = vmul.f32 %v865_v15, %v2036_v23  ;;  %v868_v41 = vmul.f32 %v866_v14, %v2043_v26  ;;  %v1201_v14 = vstv %s1200_s23 }
 0x528   : > { %911 = vmatprep.subr.mxu1 %v868_v41  ;;  %v856_v42 = vpop.permute.xlu1 %855 }
 0x529   : > { %v857_v17 = vsel %vm483_vm3, %v854_v25, %v856_v42  ;;  %v858_v18 = vsel %vm483_vm3, %v856_v42, %v854_v25  ;;  %912 = vmatpush1.msra.mxu1 %v867_v40 }
 0x52a   : > { %v859_v43 = vmul.f32 %v857_v17, %v2058_v38  ;;  %v860_v44 = vmul.f32 %v858_v18, %v2061_v39  ;;  %v638_v38 = vpop.f32.mrf.mxu0 }
 0x52c   : > { %913 = vmatprep.subr.mxu1 %v860_v44  ;;  %v848_v46 = vpop.permute.xlu1 %847 }
 0x52d   : > { %v849_v23 = vsel %vm466_vm4, %v846_v45, %v848_v46  ;;  %v850_v26 = vsel %vm466_vm4, %v848_v46, %v846_v45  ;;  %914 = vmatpush1.msra.mxu1 %v859_v43  ;;  %v1220_v45 = vstv %s1399_s24  ;;  %v1223_v46 = vstv %s1400_s25 }
 0x52e   : > { %v851_v49 = vmul.f32 %v850_v26, %v2072_v47  ;;  %v852_v50 = vmul.f32 %v849_v23, %v2075_v48  ;;  %915 = vmatprep.subr.mxu1 %v819_v16  ;;  %v640_v48 = vpop.f32.mrf.mxu0 }
 0x52f   : > { %916 = vmatpush1.msra.mxu1 %v817_v10  ;;  %v641_v5 = vadd.f32 %v640_v48, %v557_v37 }
 0x530   : > { %v840_v51 = vpop.permute.xlu1 %839  ;;  %917 = vmatprep.subr.mxu1 %v852_v50 }
 0x531   : > { %v841_v39 = vsel %vm449_vm5, %v838_v27, %v840_v51  ;;  %v842_v52 = vsel %vm449_vm5, %v840_v51, %v838_v27  ;;  %918 = vmatpush1.msra.mxu1 %v851_v49  ;;  %v1227_v49 = vstv %s1401_s18 }
 0x532   : > { %v843_v54 = vmul.f32 %v842_v52, %v2087_v56  ;;  %v844_v55 = vmul.f32 %v841_v39, %v2090_v57  ;;  %v639_v56 = vadd.f32 %v638_v38, %v557_v37 }
 0x534   : > { %v832_v47 = vpop.permute.xlu1 %831  ;;  %919 = vmatprep.subr.mxu1 %v844_v55  ;;  %v645_v13 = vmax.f32 %v639_v56, 0.0 }
 0x535   : > { %v833_v58 = vsel %vm432_vm6, %v830_v53, %v832_v47  ;;  %v834_v59 = vsel %vm432_vm6, %v832_v47, %v830_v53  ;;  %920 = vmatpush1.msra.mxu1 %v843_v54 }
 0x536   : > { %v835_v61 = vmul.f32 %v834_v59, %v2099_v62  ;;  %v836_v63 = vmul.f32 %v833_v58, %v2104_v0  ;;  %v885_v62 = vld [vmem:[%s2281_s7] sm:$0xff]  ;;  %v646_v0 = vmax.f32 %v641_v5, 0.0 }
 0x538   : > { %v824_v8 = vpop.permute.xlu1 %823  ;;  %921 = vmatprep.subr.mxu1 %v836_v63 }
 0x539   : > { %v825_v57 = vsel %vm415_vm7, %v822_v1, %v824_v8  ;;  %v826_v4 = vsel %vm415_vm7, %v824_v8, %v822_v1  ;;  %922 = vmatpush1.msra.mxu1 %v835_v61 }
 0x53a   : > { %v827_v9 = vmul.f32 %v826_v4, %v2115_v20  ;;  %v828_v10 = vmul.f32 %v825_v57, %v2118_v21 }
 0x53c   : > { %923 = vmatprep.subr.mxu1 %v828_v10 }
 0x53d   : > { %924 = vmatpush1.msra.mxu1 %v827_v9 }
 0x53e   : > { %1396 = vmatmul.mubr.msk.f32.vlgmr.msra.gmra.mxu1 %vm559_vm8, %v885_v62  ;;  %1075 = vmatprep.subr.mxu1 %v646_v0 }
 0x53f   : > { %1076 = vmatpush1.xpose.msra.mxu1 %v645_v13  ;;  %1109 = vmatprep.mubr.f32.mxu1 %v646_v0 }
 0x542   : > { %1110 = vmatmul.mubr.f32.vlgmr.msra.gmra.mxu1 %v645_v13 }
 0x5fe   : > { %v959_v7 = vpop.f32.mrf.mxu1 }
 0x600   : > { %v961_v16 = vpop.f32.mrf.mxu1 }
 0x602   : > { %v1111_v19 = vpop.f32.mrf.mxu1 }
 0x603   : > { %v1115_v20 = vsel %vm652_vm9, %v1111_v19, inf }
 0x604   : > { %1116 = vmin.xlane.f32.xlu0 %v1115_v20  ;;  %v1113_v21 = vpop.f32.mrf.mxu1 }
 0x61a   : > { %887 = vperm.xlu0 %1515, %v2146_v60  }
 0x61e   : > { %1518 = vset.pattern.permute.xlu0 %v1742_v3 }
 0x68d   : > { %v1117_v22 = vpop.xlane.xlu0 %1116 }
 0x68e   : > { %v1118_v24 = vsub.f32 %v1117_v22, %v1111_v19 }
 0x690   : > { %v1119_v25 = vmul.f32 1.442695, %v1118_v24 }
 0x692   : > { %1525 = vpow2.f32 %v1119_v25 }
 0x695   : > { %v888_v27 = vpop.permute.xlu0 %887 }
 0x696   : > { %v960_v28 = vadd.f32 %v959_v7, %v888_v27  ;;  %v962_v29 = vadd.f32 %v961_v16, %v888_v27 }
 0x698   : > { %v964_v11 = vmax.f32 %v960_v28, 0.0  ;;  %v965_v12 = vmax.f32 %v962_v29, 0.0 }
 0x69a   : > { %1004 = vmatprep.subr.mxu0 %v965_v12 }
 0x69b   : > { %1005 = vmatpush1.msra.mxu0 %v964_v11 }
 0x69c   : > { %1159 = vmatprep.subr.mxu0 %v646_v0  ;;  %1397 = vmatmul.mubr.msk.f32.vlgmr.msra.gmra.mxu0 %vm652_vm9, %v966_v30 }
 0x69d   : > { %1160 = vmatpush1.msra.mxu0 %v645_v13  ;;  %1193 = vmatprep.mubr.f32.mxu0 %v1740_v2 }
 0x69f   : > { %v1526_v31 = vpop.eup %1525 }
 0x6a0   : > { %v1121_v32 = vsel %vm652_vm9, %v1526_v31, 0.0 }
 0x6a1   : > { %1122 = vadd.xlane.f32.xlu1 %v1121_v32 }
 0x72a   : > { %v1123_v33 = vpop.xlane.xlu1 %1122 }
 0x72b   : > { %1527 = vrcp.f32 %v1123_v33 }
 0x738   : > { %v1528_v34 = vpop.eup %1527 }
 0x739   : > { %v1125_v35 = vmul.f32 %v1528_v34, %v1526_v31 }
 0x73b   : > { %1398 = vmatmul.mubr.msk.f32.vlgmr.msra.gmra.mxu0 %vm652_vm9, %v1125_v35 }
 0x75c   : > { %v1040_v36 = vpop.f32.mrf.mxu0 }
 0x75e   : > { %v1042_v15 = vpop.f32.mrf.mxu0 }
 0x7fb   : > { %v1195_v37 = vpop.f32.mrf.mxu0 }
 0x7fc   : > { %v1202_v40 = vmul.f32 %v1201_v14, %v1195_v37 }
 0x7fd   : > { %v1197_v41 = vpop.f32.mrf.mxu0 }
 0x7fe   : > { %v1203_v42 = vmul.f32 %v1201_v14, %v1197_v41  ;;  %v1204_v17 = vadd.f32 %v1202_v40, %v645_v13 }
 0x800   : > { %v1205_v2 = vadd.f32 %v1203_v42, %v646_v0 }
 0x802   : > { %v1206_v18 = vadd.f32 %v1205_v2, %v1204_v17 }
 0x804   : > { %1207 = vadd.xlane.f32.xlu1 %v1206_v18 }
 0x815   : > { %968 = vperm.xlu1 %1516, %v2146_v60  }
 0x819   : > { %1517 = vset.pattern.permute.xlu1 %v1742_v3 }
 0x88d   : > { %v1208_v43 = vpop.xlane.xlu1 %1207 }
 0x88e   : > { %v1210_v44 = vmul.f32 0.00390625, %v1208_v43 }
 0x890   : > { %v1214_v23 = vrot.slane %v1210_v44, 7  ;;  %v1217_v26 = vrot.slane %v1210_v44, 1  ;;  %v1224_v3 = vmul.f32 %v1223_v46, %v1210_v44 }
 0x891   : > { %v969_v47 = vpop.permute.xlu1 %968 }
 0x892   : > { %v1215_v50 = vsel %vm1213_vm10, 0.0, %v1214_v23  ;;  %v1218_v51 = vsel %vm1216_vm11, 0.0, %v1217_v26  ;;  %v1041_v58 = vadd.f32 %v1040_v36, %v969_v47  ;;  %v1043_v59 = vadd.f32 %v1042_v15, %v969_v47 }
 0x893   : > { %v1221_v60 = vmul.f32 %v1220_v45, %v1215_v50  ;;  %v1228_v39 = vmul.f32 %v1227_v49, %v1218_v51 }
 0x895   : > { %v1225_v38 = vadd.f32 %v1224_v3, %v1221_v60 }
 0x897   : > { %v1229_v52 = vadd.f32 %v1228_v39, %v1225_v38 }
 0x899   : > { %v1402_v53 = vmul.f32 -1.442695, %v1229_v52 }
 0x89b   : > { %1529 = vpow2.f32 %v1402_v53 }
 0x8a8   : > { %v1530_v54 = vpop.eup %1529 }
 0x8a9   : > { %v1233_v55 = vadd.f32 1.0, %v1530_v54 }
 0x8ab   : > { %1531 = vrcp.f32 %v1233_v55 }
 0x8b8   : > { %v1532_v6 = vpop.eup %1531 }
 0x8b9   : > { %1238 = vperm.xlu1 %1517, %v1532_v6  }
 0x934   : > { %v1239_v48 = vpop.permute.xlu1 %1238 }
 0x935   : > { %v1241_v61 = vmul.f32 %v1239_v48, %v1204_v17  ;;  %v1242_v63 = vmul.f32 %v1239_v48, %v1205_v2 }
 0x937   : > { %v1243_v1 = vadd.f32 %v1241_v61, %v1041_v58  ;;  %v1244_v5 = vadd.f32 %v1242_v63, %v1043_v59 }
 0x939   : > { %1245 = vst [vmem:[%s400_s22] sm:$0xff] %v1243_v1  ;;  %1246 = vst [vmem:[%s400_s22 + $0x8] sm:$0xff] %v1244_v5 }
 0x93a   : > { %1663 = shalt.err (!%p1660_p4)
}
 0x93b   : > { %s1664_s21 = scalar_lea.hbm %s2237_s17, 256  ;;  %s1668_s24 = scalar_lea.hbm %s2283_s9, 512 }
 0x93c   : > { %p1665_p1 = scmp.ne.s32.totalorder %s2237_s17, %s1664_s21  ;;  %p1669_p9 = scmp.lt.s32.totalorder %s2237_s17, %s2283_s9 }
 0x93d   : > { %p1670_p10 = scmp.lt.s32.totalorder %s1668_s24, %s1664_s21 }
 0x93e   : > { %p1666_p3 = pnand %p1665_p1, %p2311_p5 }
 0x93f   : > { %p1671_p7 = por %p1670_p10, %p1669_p9 }
 0x940   : > { %p1667_p6 = pneg %p1666_p3 }
 0x942   : > { %p1672_p12 = pnand %p1671_p7, %p1667_p6 }
 0x944   : > { %1675 = shalt.err (!%p1672_p12)
}
 0x945   : > { %1428 = dma.vmem_to_hbm [thread:$0]  (%p2311_p5), %s1263_s8, 256, %s2237_s17, %s1248_s27  }
 0x946 PF: > { %s1274_s20 = sand.u32 1, %s1714_s30   ;;  %p2312_p0 = scmp.ne.s32.totalorder %s2301_s13, 0 }
 0x947   : > { %p2313_p8 = scmp.ge.s32.totalorder %s1726_s12, 2  ;;  %s1275_s22 = scalar_lea.sflag [#allocation4], %s1274_s20 }
 0x949   : > { %p1448_p11 = pnand %p2313_p8, %p2312_p0 }
 0x94b   : > { %p1449_p13 = pneg %p1448_p11 }
 0x94d   : > { %1709 = dma.done.wait (%p1449_p13), %s1275_s22, 256  }
 0x94e   : > { %1711 = vsyncadd (%p1449_p13), %s1275_s22, 4294967040  ;;  %p25_p2 = scmp.ge.s32.totalorder %s1877_s19, 4   ;;  %s2314_s30 = smov %s1718_s10 }
 0x94f   : > { %s2315_s10 = smov %s1722_s11  ;;  %s2316_s11 = smov %s1888_s26 }
 0x950   : > { %s2317_s12 = smov %s1877_s19  ;;  %27 = sbr.rel (!%p25_p2) target bundleno = 13 (0xd), region = 118 }
 0x955   :  { %1280 = vsyncpa [#allocation3], 1 }
 0x956   :  { %1282 = vsyncpa [#allocation3 + $0x1], 1 }
 0x957   :  { %1283 = vsyncpa [#allocation8], 1 }
 0x958   :  { %1284 = vsyncpa [#allocation11], 1 }
 0x959   :  { %1285 = vsyncpa [#allocation4], 1 }
 0x95a   :  { %1287 = vsyncpa [#allocation4 + $0x1], 1 }
 0x95b   :  { %1288 = vsyncpa [#allocation5], 1 }
 0x95c   :  { %1290 = vsyncpa [#allocation5 + $0x1], 1 }

</bundles_post_ra>
